<compile_context>
chip_gen: v5e
topology: v5e:2x2
jax: 0.10.0
libtpu: 0.0.40
codegen_flags: <defaults>
</compile_context>

<pallas_src>
import functools

import jax
import jax.numpy as jnp
from jax import lax
from jax.experimental import pallas as pl
from jax.experimental.pallas import tpu as pltpu

LEAKY_SLOPE = 0.01   # nn.LeakyReLU() default negative_slope
LANE = 128
CH_ALIGN = 16        # channel padding (bf16 native (16, 128) tile)
TL_MAX = 512         # time-tile width in lanes (keeps VMEM small on v7x too)


def _round_up(x, m):
    return ((x + m - 1) // m) * m


def _leaky(z):
    return jnp.where(z > 0, z, LEAKY_SLOPE * z)


# -----------------------------------------------------------------------------
# The single fused Pallas kernel: all TemporalBlocks, one time tile per step.
# -----------------------------------------------------------------------------
def _tcn_kernel(*refs, meta, ksize, tl, multi_tile):
    """meta: tuple of (cin_p, cout_p, dilation, halo, halo_pad, has_downsample).

    refs = [x] + per-layer [w1, b1, w2, b2, (wd, bd)] + [o] +
           per-layer [in_buf, mid_buf] scratch.
    Scratch layout: columns [0, halo_pad) hold causal history, columns
    [halo_pad, halo_pad + tl) hold the current tile (lane-aligned stores).
    """
    it = iter(refs)
    x_ref = next(it)
    layer_w = []
    for (_ci, _co, _d, _h, _hp, has_ds) in meta:
        w1, b1, w2, b2 = next(it), next(it), next(it), next(it)
        wd = next(it) if has_ds else None
        bd = next(it) if has_ds else None
        layer_w.append((w1, b1, w2, b2, wd, bd))
    o_ref = next(it)
    bufs = [(next(it), next(it)) for _ in meta]

    t = pl.program_id(1)

    # Zero the causal history once per batch row (first time tile only).
    @pl.when(t == 0)
    def _init():
        for (ci, co, _d, _h, hp, _ds), (in_buf, mid_buf) in zip(meta, bufs):
            if hp > 0:
                in_buf[:, pl.ds(0, hp)] = jnp.zeros((ci, hp), in_buf.dtype)
                mid_buf[:, pl.ds(0, hp)] = jnp.zeros((co, hp), mid_buf.dtype)

    cur_b = x_ref[0]                            # (cin_p, tl) bf16
    cur = cur_b.astype(jnp.float32)

    for ((ci, co, d, _h, hp, has_ds), (w1, b1, w2, b2, wd, bd),
         (in_buf, mid_buf)) in zip(meta, layer_w, bufs):
        # Stage this block's input tile (lane-aligned dense store).
        in_buf[:, pl.ds(hp, tl)] = cur_b

        # conv1: K dilated taps stacked -> single MXU matmul, f32 accumulation.
        x1 = jnp.concatenate(
            [in_buf[:, pl.ds(hp - j * d, tl)] for j in range(ksize)], axis=0)
        z1 = jnp.dot(w1[...], x1, preferred_element_type=jnp.float32) + b1[...]
        z1 = _leaky(z1)
        # TODO(synk): dropout1/dropout2 omitted (inference); training parity
        # would need pltpu.prng_seed / pltpu.prng_random_bits.
        mid_buf[:, pl.ds(hp, tl)] = z1.astype(mid_buf.dtype)

        # conv2 (same structure, reads the VMEM-resident intermediate).
        x2 = jnp.concatenate(
            [mid_buf[:, pl.ds(hp - j * d, tl)] for j in range(ksize)], axis=0)
        z2 = jnp.dot(w2[...], x2, preferred_element_type=jnp.float32) + b2[...]
        z2 = _leaky(z2)

        # Residual (1x1 downsample conv iff channel counts differ).
        if has_ds:
            res = jnp.dot(wd[...], cur_b,
                          preferred_element_type=jnp.float32) + bd[...]
        else:
            res = cur
        cur = _leaky(z2 + res)
        cur_b = cur.astype(jnp.bfloat16)

    o_ref[0] = cur.astype(o_ref.dtype)

    # Carry the causal history to the next time tile (lane-aligned dense copy).
    if multi_tile:
        @pl.when(t + 1 < pl.num_programs(1))
        def _shift():
            for (_ci, _co, _d, _h, hp, _ds), (in_buf, mid_buf) in zip(meta, bufs):
                if hp > 0:
                    in_buf[:, pl.ds(0, hp)] = in_buf[:, pl.ds(tl, hp)]
                    mid_buf[:, pl.ds(0, hp)] = mid_buf[:, pl.ds(tl, hp)]


def _tcn_pallas_call(x_pad, flat_weights, *, meta, kernel_size, tl, c_last_p):
    n, cin_p, l_p = x_pad.shape
    n_tiles = l_p // tl

    kernel = functools.partial(_tcn_kernel, meta=meta, ksize=kernel_size,
                               tl=tl, multi_tile=n_tiles > 1)

    in_specs = [pl.BlockSpec((1, cin_p, tl), lambda b, t: (b, 0, t))]
    scratch = []
    w_iter = iter(flat_weights)
    for (ci, co, _d, _h, hp, has_ds) in meta:
        n_w = 6 if has_ds else 4
        for _ in range(n_w):
            w = next(w_iter)
            in_specs.append(pl.BlockSpec(w.shape, lambda b, t: (0, 0)))
        scratch.append(pltpu.VMEM((ci, hp + tl), jnp.bfloat16))
        scratch.append(pltpu.VMEM((co, hp + tl), jnp.bfloat16))

    return pl.pallas_call(
        kernel,
        out_shape=jax.ShapeDtypeStruct((n, c_last_p, l_p), jnp.float32),
        grid_spec=pltpu.PrefetchScalarGridSpec(
            num_scalar_prefetch=0,
            grid=(n, n_tiles),
            in_specs=in_specs,
            out_specs=pl.BlockSpec((1, c_last_p, tl), lambda b, t: (b, 0, t)),
            scratch_shapes=scratch,
        ),
        compiler_params=pltpu.CompilerParams(
            # Batch axis sharded across TensorCores; time axis is sequential
            # because the causal history is carried in scratch.
            dimension_semantics=("parallel", "arbitrary")),
    )(x_pad, *flat_weights)


# -----------------------------------------------------------------------------
# Host-side one-time parameter preparation (weight-norm fold, tap packing,
# channel padding, bf16 cast) and the jit-able forward.
# -----------------------------------------------------------------------------
def _fold_weight_norm(v, g):
    """PyTorch weight_norm (dim=0): w = g * v / ||v||, norm over dims != 0."""
    norm = jnp.sqrt(jnp.sum(v * v, axis=tuple(range(1, v.ndim)), keepdims=True))
    return v * (g.reshape((-1,) + (1,) * (v.ndim - 1)) / norm)


def _pack_taps(w, cout_p, cin_p):
    """(c_out, c_in, K) -> (cout_p, K*cin_p) bf16 so block j contracts with
    the tap reading x[t - j*dilation] (i.e. W[:, :, K-1-j])."""
    c_out, c_in, k = w.shape
    wp = jnp.pad(w, ((0, cout_p - c_out), (0, cin_p - c_in), (0, 0)))
    wp = wp[:, :, ::-1]
    wp = jnp.transpose(wp, (0, 2, 1)).reshape(cout_p, k * cin_p)
    return wp.astype(jnp.bfloat16)


def prepare_tcn_params(params, kernel_size):
    """Fold/pack/pad weights once (outside the per-forward jit)."""
    flat, meta = [], []
    c_last = None
    for i, p in enumerate(params):
        dilation = 2 ** i
        halo = (kernel_size - 1) * dilation
        halo_pad = _round_up(halo, LANE) if halo > 0 else 0
        c_out, c_in, k = p["v1"].shape
        assert k == kernel_size
        cin_p = _round_up(max(c_in, CH_ALIGN), CH_ALIGN)
        cout_p = _round_up(max(c_out, CH_ALIGN), CH_ALIGN)

        w1 = _fold_weight_norm(p["v1"], p["g1"])
        w2 = _fold_weight_norm(p["v2"], p["g2"])
        flat += [
            _pack_taps(w1, cout_p, cin_p),
            jnp.pad(p["b1"], (0, cout_p - c_out)).reshape(cout_p, 1).astype(jnp.float32),
            _pack_taps(w2, cout_p, cout_p),
            jnp.pad(p["b2"], (0, cout_p - c_out)).reshape(cout_p, 1).astype(jnp.float32),
        ]
        has_ds = "wd" in p
        if has_ds:
            flat += [
                jnp.pad(p["wd"], ((0, cout_p - c_out), (0, cin_p - c_in))).astype(jnp.bfloat16),
                jnp.pad(p["bd"], (0, cout_p - c_out)).reshape(cout_p, 1).astype(jnp.float32),
            ]
        else:
            assert c_in == c_out
        meta.append((cin_p, cout_p, dilation, halo, halo_pad, has_ds))
        c_last = c_out
    return tuple(flat), tuple(meta), c_last


def tcn_forward(x, flat_weights, *, meta, kernel_size, c_last):
    """Forward pass of TemporalConvNet. x: (N, C_in, L) -> (N, C_last, L)."""
    n, c_in, l = x.shape
    cin_p = meta[0][0]
    c_last_p = meta[-1][1]

    l_lane = _round_up(l, LANE)
    if l_lane <= TL_MAX:
        tl, l_p = l_lane, l_lane
    else:
        tl, l_p = TL_MAX, _round_up(l, TL_MAX)

    x_pad = jnp.pad(x, ((0, 0), (0, cin_p - c_in),
                        (0, l_p - l))).astype(jnp.bfloat16)
    out = _tcn_pallas_call(x_pad, flat_weights, meta=meta,
                           kernel_size=kernel_size, tl=tl, c_last_p=c_last_p)
    return out[:, :c_last, :l]


def temporal_conv_net_params(key, num_inputs, num_channels, kernel_size):
    """Random parameters mimicking the PyTorch module (weight-norm v/g form)."""
    params = []
    c_in = num_inputs
    for c_out in num_channels:
        key, k1, k2, k3, k4, k5, k6, k7, k8 = jax.random.split(key, 9)
        v1 = 0.01 * jax.random.normal(k1, (c_out, c_in, kernel_size), jnp.float32)
        g1 = jnp.sqrt(jnp.sum(v1 * v1, axis=(1, 2))) * (
            1.0 + 0.1 * jax.random.normal(k2, (c_out,), jnp.float32))
        v2 = 0.01 * jax.random.normal(k3, (c_out, c_out, kernel_size), jnp.float32)
        g2 = jnp.sqrt(jnp.sum(v2 * v2, axis=(1, 2))) * (
            1.0 + 0.1 * jax.random.normal(k4, (c_out,), jnp.float32))
        blk = dict(
            v1=v1, g1=g1, b1=0.1 * jax.random.normal(k5, (c_out,), jnp.float32),
            v2=v2, g2=g2, b2=0.1 * jax.random.normal(k6, (c_out,), jnp.float32))
        if c_in != c_out:
            blk["wd"] = 0.01 * jax.random.normal(k7, (c_out, c_in), jnp.float32)
            blk["bd"] = 0.1 * jax.random.normal(k8, (c_out,), jnp.float32)
        params.append(blk)
        c_in = c_out
    return params


# -----------------------------------------------------------------------------
# Pure-JAX f32 reference (matches PyTorch semantics) for verification.
# -----------------------------------------------------------------------------
def _ref_causal_conv(x, w, b, dilation):
    n, c_in, l = x.shape
    c_out, _, k = w.shape
    pad = (k - 1) * dilation
    xp = jnp.pad(x, ((0, 0), (0, 0), (pad, 0)))
    out = jnp.zeros((n, c_out, l), jnp.float32)
    for j in range(k):
        xs = xp[:, :, j * dilation:j * dilation + l]
        out = out + jnp.einsum("oi,nil->nol", w[:, :, j], xs,
                               precision=lax.Precision.HIGHEST)
    return out + b[None, :, None]


def temporal_conv_net_reference(x, params, kernel_size):
    h = x.astype(jnp.float32)
    for i, p in enumerate(params):
        dilation = 2 ** i
        w1 = _fold_weight_norm(p["v1"], p["g1"])
        w2 = _fold_weight_norm(p["v2"], p["g2"])
        z = _leaky(_ref_causal_conv(h, w1, p["b1"], dilation))
        z = _leaky(_ref_causal_conv(z, w2, p["b2"], dilation))
        if "wd" in p:
            res = jnp.einsum("oi,nil->nol", p["wd"], h,
                             precision=lax.Precision.HIGHEST) + p["bd"][None, :, None]
        else:
            res = h
        h = _leaky(z + res)
    return h


if __name__ == "__main__":
    key = jax.random.PRNGKey(0)
    k_x, k_p = jax.random.split(key)

    N, C_IN, L = 2, 4, 16
    KERNEL_SIZE = 3
    NUM_CHANNELS = [8, 8]   # block 0: 4->8 (uses 1x1 downsample), block 1: 8->8

    x = jax.random.normal(k_x, (N, C_IN, L), dtype=jnp.float32)
    params = temporal_conv_net_params(k_p, C_IN, NUM_CHANNELS, KERNEL_SIZE)

    # One-time weight preparation (fold weight_norm, pack taps, pad, bf16).
    flat, meta, c_last = prepare_tcn_params(params, KERNEL_SIZE)

    fwd = jax.jit(functools.partial(tcn_forward, meta=meta,
                                    kernel_size=KERNEL_SIZE, c_last=c_last))
    out = jax.block_until_ready(fwd(x, flat))

    ref = temporal_conv_net_reference(x, params, KERNEL_SIZE)
    assert out.shape == (N, NUM_CHANNELS[-1], L), out.shape
    assert out.dtype == jnp.float32
    max_err = float(jnp.max(jnp.abs(out - ref)))
    # Tolerance loosened for bf16 matmul operands / bf16 activation storage
    # (accumulation is f32).
    assert jnp.allclose(out, ref, atol=2e-2, rtol=2e-2), max_err

    print("KERNEL_OK")
</pallas_src>

<mosaic_0001>
module attributes {stable_mosaic.version = 11 : i64} {
  func.func @_tcn_kernel(%arg0: i32, %arg1: i32, %arg2: memref<1x16x128xbf16, #tpu.memory_space<vmem>>, %arg3: memref<16x48xbf16, #tpu.memory_space<vmem>>, %arg4: memref<16x1xf32, #tpu.memory_space<vmem>>, %arg5: memref<16x48xbf16, #tpu.memory_space<vmem>>, %arg6: memref<16x1xf32, #tpu.memory_space<vmem>>, %arg7: memref<16x16xbf16, #tpu.memory_space<vmem>>, %arg8: memref<16x1xf32, #tpu.memory_space<vmem>>, %arg9: memref<16x48xbf16, #tpu.memory_space<vmem>>, %arg10: memref<16x1xf32, #tpu.memory_space<vmem>>, %arg11: memref<16x48xbf16, #tpu.memory_space<vmem>>, %arg12: memref<16x1xf32, #tpu.memory_space<vmem>>, %arg13: memref<1x16x128xf32, #tpu.memory_space<vmem>>, %arg14: memref<16x256xbf16, #tpu.memory_space<vmem>>, %arg15: memref<16x256xbf16, #tpu.memory_space<vmem>>, %arg16: memref<16x256xbf16, #tpu.memory_space<vmem>>, %arg17: memref<16x256xbf16, #tpu.memory_space<vmem>>) attributes {dimension_semantics = [#tpu.dimension_semantics<parallel>, #tpu.dimension_semantics<arbitrary>], iteration_bounds = array<i64: 2, 1>, scalar_prefetch = 0 : i64, scratch_operands = 4 : i64, tpu.core_type = #tpu.core_type<tc>, window_params = [{transform_indices = @transform_0, window_bounds = array<i64: 1, 16, 128>}, {pipeline_mode = #tpu.pipeline_mode<synchronous>, transform_indices = @transform_1, window_bounds = array<i64: 16, 48>}, {pipeline_mode = #tpu.pipeline_mode<synchronous>, transform_indices = @transform_2, window_bounds = array<i64: 16, 1>}, {pipeline_mode = #tpu.pipeline_mode<synchronous>, transform_indices = @transform_3, window_bounds = array<i64: 16, 48>}, {pipeline_mode = #tpu.pipeline_mode<synchronous>, transform_indices = @transform_4, window_bounds = array<i64: 16, 1>}, {pipeline_mode = #tpu.pipeline_mode<synchronous>, transform_indices = @transform_5, window_bounds = array<i64: 16, 16>}, {pipeline_mode = #tpu.pipeline_mode<synchronous>, transform_indices = @transform_6, window_bounds = array<i64: 16, 1>}, {pipeline_mode = #tpu.pipeline_mode<synchronous>, transform_indices = @transform_7, window_bounds = array<i64: 16, 48>}, {pipeline_mode = #tpu.pipeline_mode<synchronous>, transform_indices = @transform_8, window_bounds = array<i64: 16, 1>}, {pipeline_mode = #tpu.pipeline_mode<synchronous>, transform_indices = @transform_9, window_bounds = array<i64: 16, 48>}, {pipeline_mode = #tpu.pipeline_mode<synchronous>, transform_indices = @transform_10, window_bounds = array<i64: 16, 1>}, {transform_indices = @transform_11, window_bounds = array<i64: 1, 16, 128>}]} {
    %c0_i32 = arith.constant 0 : i32
    %0 = arith.cmpi eq, %arg1, %c0_i32 : i32
    %1 = arith.extui %0 : i1 to i32
    %c0_i32_0 = arith.constant 0 : i32
    %2 = arith.cmpi ne, %1, %c0_i32_0 : i32
    scf.if %2 {
      %cst_70 = arith.constant 0.000000e+00 : bf16
      %88 = vector.broadcast %cst_70 : bf16 to vector<16x128xbf16>
      %c0_71 = arith.constant 0 : index
      %c0_72 = arith.constant 0 : index
      %89 = vector.load %arg14[%c0_71, %c0_72] : memref<16x256xbf16, #tpu.memory_space<vmem>>, vector<16x128xbf16>
      tpu.vector_store %arg14[%c0_71, %c0_72], %88 {strides = array<i32>} : memref<16x256xbf16, #tpu.memory_space<vmem>>, vector<16x128xbf16>,
      %cst_73 = arith.constant 0.000000e+00 : bf16
      %90 = vector.broadcast %cst_73 : bf16 to vector<16x128xbf16>
      %c0_74 = arith.constant 0 : index
      %c0_75 = arith.constant 0 : index
      %91 = vector.load %arg15[%c0_74, %c0_75] : memref<16x256xbf16, #tpu.memory_space<vmem>>, vector<16x128xbf16>
      tpu.vector_store %arg15[%c0_74, %c0_75], %90 {strides = array<i32>} : memref<16x256xbf16, #tpu.memory_space<vmem>>, vector<16x128xbf16>,
      %cst_76 = arith.constant 0.000000e+00 : bf16
      %92 = vector.broadcast %cst_76 : bf16 to vector<16x128xbf16>
      %c0_77 = arith.constant 0 : index
      %c0_78 = arith.constant 0 : index
      %93 = vector.load %arg16[%c0_77, %c0_78] : memref<16x256xbf16, #tpu.memory_space<vmem>>, vector<16x128xbf16>
      tpu.vector_store %arg16[%c0_77, %c0_78], %92 {strides = array<i32>} : memref<16x256xbf16, #tpu.memory_space<vmem>>, vector<16x128xbf16>,
      %cst_79 = arith.constant 0.000000e+00 : bf16
      %94 = vector.broadcast %cst_79 : bf16 to vector<16x128xbf16>
      %c0_80 = arith.constant 0 : index
      %c0_81 = arith.constant 0 : index
      %95 = vector.load %arg17[%c0_80, %c0_81] : memref<16x256xbf16, #tpu.memory_space<vmem>>, vector<16x128xbf16>
      tpu.vector_store %arg17[%c0_80, %c0_81], %94 {strides = array<i32>} : memref<16x256xbf16, #tpu.memory_space<vmem>>, vector<16x128xbf16>,
    } else {
    }
    %c0 = arith.constant 0 : index
    %c0_1 = arith.constant 0 : index
    %c0_2 = arith.constant 0 : index
    %3 = vector.load %arg2[%c0, %c0_1, %c0_2] : memref<1x16x128xbf16, #tpu.memory_space<vmem>>, vector<1x16x128xbf16>
    %4 = vector.shape_cast %3 : vector<1x16x128xbf16> to vector<16x128xbf16>
    %c0_3 = arith.constant 0 : index
    %c128 = arith.constant 128 : index
    %5 = vector.load %arg14[%c0_3, %c128] : memref<16x256xbf16, #tpu.memory_space<vmem>>, vector<16x128xbf16>
    tpu.vector_store %arg14[%c0_3, %c128], %4 {strides = array<i32>} : memref<16x256xbf16, #tpu.memory_space<vmem>>, vector<16x128xbf16>,
    %c0_4 = arith.constant 0 : index
    %c128_5 = arith.constant 128 : index
    %6 = vector.load %arg14[%c0_4, %c128_5] : memref<16x256xbf16, #tpu.memory_space<vmem>>, vector<16x128xbf16>
    %c0_6 = arith.constant 0 : index
    %c127 = arith.constant 127 : index
    %7 = vector.load %arg14[%c0_6, %c127] : memref<16x256xbf16, #tpu.memory_space<vmem>>, vector<16x128xbf16>
    %c0_7 = arith.constant 0 : index
    %c126 = arith.constant 126 : index
    %8 = vector.load %arg14[%c0_7, %c126] : memref<16x256xbf16, #tpu.memory_space<vmem>>, vector<16x128xbf16>
    %9 = tpu.concatenate %6, %7, %8 in 0 : vector<16x128xbf16>, vector<16x128xbf16>, vector<16x128xbf16> -> vector<48x128xbf16>
    %c0_8 = arith.constant 0 : index
    %c0_9 = arith.constant 0 : index
    %10 = vector.load %arg3[%c0_8, %c0_9] : memref<16x48xbf16, #tpu.memory_space<vmem>>, vector<16x48xbf16>
    %cst = arith.constant dense<0.000000e+00> : vector<16x128xf32>
    %11 = tpu.matmul %10, %9, %cst {dimension_numbers = #tpu.dot_dimension_numbers<[1], [0], [0], [1], [0, 0, 1, 1], [], []>} : vector<16x48xbf16>, vector<48x128xbf16>, vector<16x128xf32> -> vector<16x128xf32>
    %c0_10 = arith.constant 0 : index
    %c0_11 = arith.constant 0 : index
    %12 = vector.load %arg4[%c0_10, %c0_11] : memref<16x1xf32, #tpu.memory_space<vmem>>, vector<16x1xf32>
    %13 = vector.broadcast %12 : vector<16x1xf32> to vector<16x128xf32>
    %14 = arith.addf %11, %13 : vector<16x128xf32>
    %cst_12 = arith.constant 0.000000e+00 : f32
    %15 = vector.broadcast %cst_12 : f32 to vector<16x128xf32>
    %16 = arith.cmpf ogt, %14, %15 : vector<16x128xf32>
    %cst_13 = arith.constant 0.00999999977 : f32
    %17 = vector.broadcast %cst_13 : f32 to vector<16x128xf32>
    %18 = arith.mulf %17, %14 : vector<16x128xf32>
    %19 = arith.select %16, %14, %18 : vector<16x128xi1>, vector<16x128xf32>
    %20 = arith.truncf %19 : vector<16x128xf32> to vector<16x128xbf16>
    %c0_14 = arith.constant 0 : index
    %c128_15 = arith.constant 128 : index
    %21 = vector.load %arg15[%c0_14, %c128_15] : memref<16x256xbf16, #tpu.memory_space<vmem>>, vector<16x128xbf16>
    tpu.vector_store %arg15[%c0_14, %c128_15], %20 {strides = array<i32>} : memref<16x256xbf16, #tpu.memory_space<vmem>>, vector<16x128xbf16>,
    %c0_16 = arith.constant 0 : index
    %c128_17 = arith.constant 128 : index
    %22 = vector.load %arg15[%c0_16, %c128_17] : memref<16x256xbf16, #tpu.memory_space<vmem>>, vector<16x128xbf16>
    %c0_18 = arith.constant 0 : index
    %c127_19 = arith.constant 127 : index
    %23 = vector.load %arg15[%c0_18, %c127_19] : memref<16x256xbf16, #tpu.memory_space<vmem>>, vector<16x128xbf16>
    %c0_20 = arith.constant 0 : index
    %c126_21 = arith.constant 126 : index
    %24 = vector.load %arg15[%c0_20, %c126_21] : memref<16x256xbf16, #tpu.memory_space<vmem>>, vector<16x128xbf16>
    %25 = tpu.concatenate %22, %23, %24 in 0 : vector<16x128xbf16>, vector<16x128xbf16>, vector<16x128xbf16> -> vector<48x128xbf16>
    %c0_22 = arith.constant 0 : index
    %c0_23 = arith.constant 0 : index
    %26 = vector.load %arg5[%c0_22, %c0_23] : memref<16x48xbf16, #tpu.memory_space<vmem>>, vector<16x48xbf16>
    %cst_24 = arith.constant dense<0.000000e+00> : vector<16x128xf32>
    %27 = tpu.matmul %26, %25, %cst_24 {dimension_numbers = #tpu.dot_dimension_numbers<[1], [0], [0], [1], [0, 0, 1, 1], [], []>} : vector<16x48xbf16>, vector<48x128xbf16>, vector<16x128xf32> -> vector<16x128xf32>
    %c0_25 = arith.constant 0 : index
    %c0_26 = arith.constant 0 : index
    %28 = vector.load %arg6[%c0_25, %c0_26] : memref<16x1xf32, #tpu.memory_space<vmem>>, vector<16x1xf32>
    %29 = vector.broadcast %28 : vector<16x1xf32> to vector<16x128xf32>
    %30 = arith.addf %27, %29 : vector<16x128xf32>
    %cst_27 = arith.constant 0.000000e+00 : f32
    %31 = vector.broadcast %cst_27 : f32 to vector<16x128xf32>
    %32 = arith.cmpf ogt, %30, %31 : vector<16x128xf32>
    %cst_28 = arith.constant 0.00999999977 : f32
    %33 = vector.broadcast %cst_28 : f32 to vector<16x128xf32>
    %34 = arith.mulf %33, %30 : vector<16x128xf32>
    %35 = arith.select %32, %30, %34 : vector<16x128xi1>, vector<16x128xf32>
    %c0_29 = arith.constant 0 : index
    %c0_30 = arith.constant 0 : index
    %36 = vector.load %arg7[%c0_29, %c0_30] : memref<16x16xbf16, #tpu.memory_space<vmem>>, vector<16x16xbf16>
    %cst_31 = arith.constant dense<0.000000e+00> : vector<16x128xf32>
    %37 = tpu.matmul %36, %4, %cst_31 {dimension_numbers = #tpu.dot_dimension_numbers<[1], [0], [0], [1], [0, 0, 1, 1], [], []>} : vector<16x16xbf16>, vector<16x128xbf16>, vector<16x128xf32> -> vector<16x128xf32>
    %c0_32 = arith.constant 0 : index
    %c0_33 = arith.constant 0 : index
    %38 = vector.load %arg8[%c0_32, %c0_33] : memref<16x1xf32, #tpu.memory_space<vmem>>, vector<16x1xf32>
    %39 = vector.broadcast %38 : vector<16x1xf32> to vector<16x128xf32>
    %40 = arith.addf %37, %39 : vector<16x128xf32>
    %41 = arith.addf %35, %40 : vector<16x128xf32>
    %cst_34 = arith.constant 0.000000e+00 : f32
    %42 = vector.broadcast %cst_34 : f32 to vector<16x128xf32>
    %43 = arith.cmpf ogt, %41, %42 : vector<16x128xf32>
    %cst_35 = arith.constant 0.00999999977 : f32
    %44 = vector.broadcast %cst_35 : f32 to vector<16x128xf32>
    %45 = arith.mulf %44, %41 : vector<16x128xf32>
    %46 = arith.select %43, %41, %45 : vector<16x128xi1>, vector<16x128xf32>
    %47 = arith.truncf %46 : vector<16x128xf32> to vector<16x128xbf16>
    %c0_36 = arith.constant 0 : index
    %c128_37 = arith.constant 128 : index
    %48 = vector.load %arg16[%c0_36, %c128_37] : memref<16x256xbf16, #tpu.memory_space<vmem>>, vector<16x128xbf16>
    tpu.vector_store %arg16[%c0_36, %c128_37], %47 {strides = array<i32>} : memref<16x256xbf16, #tpu.memory_space<vmem>>, vector<16x128xbf16>,
    %c0_38 = arith.constant 0 : index
    %c128_39 = arith.constant 128 : index
    %49 = vector.load %arg16[%c0_38, %c128_39] : memref<16x256xbf16, #tpu.memory_space<vmem>>, vector<16x128xbf16>
    %c0_40 = arith.constant 0 : index
    %c126_41 = arith.constant 126 : index
    %50 = vector.load %arg16[%c0_40, %c126_41] : memref<16x256xbf16, #tpu.memory_space<vmem>>, vector<16x128xbf16>
    %c0_42 = arith.constant 0 : index
    %c124 = arith.constant 124 : index
    %51 = vector.load %arg16[%c0_42, %c124] : memref<16x256xbf16, #tpu.memory_space<vmem>>, vector<16x128xbf16>
    %52 = tpu.concatenate %49, %50, %51 in 0 : vector<16x128xbf16>, vector<16x128xbf16>, vector<16x128xbf16> -> vector<48x128xbf16>
    %c0_43 = arith.constant 0 : index
    %c0_44 = arith.constant 0 : index
    %53 = vector.load %arg9[%c0_43, %c0_44] : memref<16x48xbf16, #tpu.memory_space<vmem>>, vector<16x48xbf16>
    %cst_45 = arith.constant dense<0.000000e+00> : vector<16x128xf32>
    %54 = tpu.matmul %53, %52, %cst_45 {dimension_numbers = #tpu.dot_dimension_numbers<[1], [0], [0], [1], [0, 0, 1, 1], [], []>} : vector<16x48xbf16>, vector<48x128xbf16>, vector<16x128xf32> -> vector<16x128xf32>
    %c0_46 = arith.constant 0 : index
    %c0_47 = arith.constant 0 : index
    %55 = vector.load %arg10[%c0_46, %c0_47] : memref<16x1xf32, #tpu.memory_space<vmem>>, vector<16x1xf32>
    %56 = vector.broadcast %55 : vector<16x1xf32> to vector<16x128xf32>
    %57 = arith.addf %54, %56 : vector<16x128xf32>
    %cst_48 = arith.constant 0.000000e+00 : f32
    %58 = vector.broadcast %cst_48 : f32 to vector<16x128xf32>
    %59 = arith.cmpf ogt, %57, %58 : vector<16x128xf32>
    %cst_49 = arith.constant 0.00999999977 : f32
    %60 = vector.broadcast %cst_49 : f32 to vector<16x128xf32>
    %61 = arith.mulf %60, %57 : vector<16x128xf32>
    %62 = arith.select %59, %57, %61 : vector<16x128xi1>, vector<16x128xf32>
    %63 = arith.truncf %62 : vector<16x128xf32> to vector<16x128xbf16>
    %c0_50 = arith.constant 0 : index
    %c128_51 = arith.constant 128 : index
    %64 = vector.load %arg17[%c0_50, %c128_51] : memref<16x256xbf16, #tpu.memory_space<vmem>>, vector<16x128xbf16>
    tpu.vector_store %arg17[%c0_50, %c128_51], %63 {strides = array<i32>} : memref<16x256xbf16, #tpu.memory_space<vmem>>, vector<16x128xbf16>,
    %c0_52 = arith.constant 0 : index
    %c128_53 = arith.constant 128 : index
    %65 = vector.load %arg17[%c0_52, %c128_53] : memref<16x256xbf16, #tpu.memory_space<vmem>>, vector<16x128xbf16>
    %c0_54 = arith.constant 0 : index
    %c126_55 = arith.constant 126 : index
    %66 = vector.load %arg17[%c0_54, %c126_55] : memref<16x256xbf16, #tpu.memory_space<vmem>>, vector<16x128xbf16>
    %c0_56 = arith.constant 0 : index
    %c124_57 = arith.constant 124 : index
    %67 = vector.load %arg17[%c0_56, %c124_57] : memref<16x256xbf16, #tpu.memory_space<vmem>>, vector<16x128xbf16>
    %68 = tpu.concatenate %65, %66, %67 in 0 : vector<16x128xbf16>, vector<16x128xbf16>, vector<16x128xbf16> -> vector<48x128xbf16>
    %c0_58 = arith.constant 0 : index
    %c0_59 = arith.constant 0 : index
    %69 = vector.load %arg11[%c0_58, %c0_59] : memref<16x48xbf16, #tpu.memory_space<vmem>>, vector<16x48xbf16>
    %cst_60 = arith.constant dense<0.000000e+00> : vector<16x128xf32>
    %70 = tpu.matmul %69, %68, %cst_60 {dimension_numbers = #tpu.dot_dimension_numbers<[1], [0], [0], [1], [0, 0, 1, 1], [], []>} : vector<16x48xbf16>, vector<48x128xbf16>, vector<16x128xf32> -> vector<16x128xf32>
    %c0_61 = arith.constant 0 : index
    %c0_62 = arith.constant 0 : index
    %71 = vector.load %arg12[%c0_61, %c0_62] : memref<16x1xf32, #tpu.memory_space<vmem>>, vector<16x1xf32>
    %72 = vector.broadcast %71 : vector<16x1xf32> to vector<16x128xf32>
    %73 = arith.addf %70, %72 : vector<16x128xf32>
    %cst_63 = arith.constant 0.000000e+00 : f32
    %74 = vector.broadcast %cst_63 : f32 to vector<16x128xf32>
    %75 = arith.cmpf ogt, %73, %74 : vector<16x128xf32>
    %cst_64 = arith.constant 0.00999999977 : f32
    %76 = vector.broadcast %cst_64 : f32 to vector<16x128xf32>
    %77 = arith.mulf %76, %73 : vector<16x128xf32>
    %78 = arith.select %75, %73, %77 : vector<16x128xi1>, vector<16x128xf32>
    %79 = arith.addf %78, %46 : vector<16x128xf32>
    %cst_65 = arith.constant 0.000000e+00 : f32
    %80 = vector.broadcast %cst_65 : f32 to vector<16x128xf32>
    %81 = arith.cmpf ogt, %79, %80 : vector<16x128xf32>
    %cst_66 = arith.constant 0.00999999977 : f32
    %82 = vector.broadcast %cst_66 : f32 to vector<16x128xf32>
    %83 = arith.mulf %82, %79 : vector<16x128xf32>
    %84 = arith.select %81, %79, %83 : vector<16x128xi1>, vector<16x128xf32>
    %c0_67 = arith.constant 0 : index
    %c0_68 = arith.constant 0 : index
    %c0_69 = arith.constant 0 : index
    %85 = vector.load %arg13[%c0_67, %c0_68, %c0_69] : memref<1x16x128xf32, #tpu.memory_space<vmem>>, vector<1x16x128xf32>
    %86 = vector.shape_cast %85 : vector<1x16x128xf32> to vector<16x128xf32>
    %87 = vector.shape_cast %84 : vector<16x128xf32> to vector<1x16x128xf32>
    tpu.vector_store %arg13[%c0_67, %c0_68, %c0_69], %87 {strides = array<i32>} : memref<1x16x128xf32, #tpu.memory_space<vmem>>, vector<1x16x128xf32>,
    return
  }
  func.func @transform_0(%arg0: i32, %arg1: i32) -> (i32, i32, i32) {
    %c0_i32 = arith.constant 0 : i32
    %c0_i32_0 = arith.constant 0 : i32
    return %arg0, %c0_i32, %arg1 : i32, i32, i32
  }
  func.func @transform_1(%arg0: i32, %arg1: i32) -> (i32, i32) {
    %c0_i32 = arith.constant 0 : i32
    %c0_i32_0 = arith.constant 0 : i32
    %c0_i32_1 = arith.constant 0 : i32
    return %c0_i32, %c0_i32_0 : i32, i32
  }
  func.func @transform_2(%arg0: i32, %arg1: i32) -> (i32, i32) {
    %c0_i32 = arith.constant 0 : i32
    %c0_i32_0 = arith.constant 0 : i32
    %c0_i32_1 = arith.constant 0 : i32
    return %c0_i32, %c0_i32_0 : i32, i32
  }
  func.func @transform_3(%arg0: i32, %arg1: i32) -> (i32, i32) {
    %c0_i32 = arith.constant 0 : i32
    %c0_i32_0 = arith.constant 0 : i32
    %c0_i32_1 = arith.constant 0 : i32
    return %c0_i32, %c0_i32_0 : i32, i32
  }
  func.func @transform_4(%arg0: i32, %arg1: i32) -> (i32, i32) {
    %c0_i32 = arith.constant 0 : i32
    %c0_i32_0 = arith.constant 0 : i32
    %c0_i32_1 = arith.constant 0 : i32
    return %c0_i32, %c0_i32_0 : i32, i32
  }
  func.func @transform_5(%arg0: i32, %arg1: i32) -> (i32, i32) {
    %c0_i32 = arith.constant 0 : i32
    %c0_i32_0 = arith.constant 0 : i32
    %c0_i32_1 = arith.constant 0 : i32
    return %c0_i32, %c0_i32_0 : i32, i32
  }
  func.func @transform_6(%arg0: i32, %arg1: i32) -> (i32, i32) {
    %c0_i32 = arith.constant 0 : i32
    %c0_i32_0 = arith.constant 0 : i32
    %c0_i32_1 = arith.constant 0 : i32
    return %c0_i32, %c0_i32_0 : i32, i32
  }
  func.func @transform_7(%arg0: i32, %arg1: i32) -> (i32, i32) {
    %c0_i32 = arith.constant 0 : i32
    %c0_i32_0 = arith.constant 0 : i32
    %c0_i32_1 = arith.constant 0 : i32
    return %c0_i32, %c0_i32_0 : i32, i32
  }
  func.func @transform_8(%arg0: i32, %arg1: i32) -> (i32, i32) {
    %c0_i32 = arith.constant 0 : i32
    %c0_i32_0 = arith.constant 0 : i32
    %c0_i32_1 = arith.constant 0 : i32
    return %c0_i32, %c0_i32_0 : i32, i32
  }
  func.func @transform_9(%arg0: i32, %arg1: i32) -> (i32, i32) {
    %c0_i32 = arith.constant 0 : i32
    %c0_i32_0 = arith.constant 0 : i32
    %c0_i32_1 = arith.constant 0 : i32
    return %c0_i32, %c0_i32_0 : i32, i32
  }
  func.func @transform_10(%arg0: i32, %arg1: i32) -> (i32, i32) {
    %c0_i32 = arith.constant 0 : i32
    %c0_i32_0 = arith.constant 0 : i32
    %c0_i32_1 = arith.constant 0 : i32
    return %c0_i32, %c0_i32_0 : i32, i32
  }
  func.func @transform_11(%arg0: i32, %arg1: i32) -> (i32, i32, i32) {
    %c0_i32 = arith.constant 0 : i32
    %c0_i32_0 = arith.constant 0 : i32
    return %arg0, %c0_i32, %arg1 : i32, i32, i32
  }
}

</mosaic_0001>

<bundles_post_ra>
// kernel: tcn_forward.1
= control target key start
LH: loop header
LB: loop body
LE: loop exit
PB: predicated region body
PF: predicated region fallthrough
CT: control target
= control target key end

     0   :  { %s1110_s17 = smov 0   ;;  %s1112_s18 = smov 0   ;;  %s1239_s0 = inlined_call_operand.vmem [shape: bf16[2,16,128], index: 0, kind: input, shape index: {}]   ;;  %s1240_s1 = inlined_call_operand.vmem [shape: bf16[16,48], index: 1, kind: input, shape index: {}]   ;;  %s1241_s2 = inlined_call_operand.vmem [shape: f32[16,1], index: 2, kind: input, shape index: {}]   ;;  %s1242_s3 = inlined_call_operand.vmem [shape: bf16[16,48], index: 3, kind: input, shape index: {}]   ;;  %s1243_s4 = inlined_call_operand.vmem [shape: f32[16,1], index: 4, kind: input, shape index: {}]   ;;  %s1244_s5 = inlined_call_operand.vmem [shape: bf16[16,16], index: 5, kind: input, shape index: {}]   ;;  %s1245_s6 = inlined_call_operand.vmem [shape: f32[16,1], index: 6, kind: input, shape index: {}]   ;;  %s1246_s7 = inlined_call_operand.vmem [shape: bf16[16,48], index: 7, kind: input, shape index: {}]   ;;  %s1247_s8 = inlined_call_operand.vmem [shape: f32[16,1], index: 8, kind: input, shape index: {}]   ;;  %s1248_s9 = inlined_call_operand.vmem [shape: bf16[16,48], index: 9, kind: input, shape index: {}]   ;;  %s1249_s10 = inlined_call_operand.vmem [shape: f32[16,1], index: 10, kind: input, shape index: {}]   ;;  %s1250_s11 = inlined_call_operand.vmem [shape: f32[2,16,128], index: 11, kind: output, shape index: {}]  }
   0x1   :  { %s1114_s19 = smov 0  }
   0x2 LB: > { %s33_s20 = sadd.s32 1, %s1040_s18  ;;  %p887_p0 = scmp.ge.s32.totalorder %s1044_s19, 1  ;;  %s1044_s19 = sphi %s1114_s19, %s21_s19   ;;  %s1040_s18 = sphi %s1112_s18, %s1252_s18   ;;  %s1036_s17 = sphi %s1110_s17, %s1251_s17  }
   0x3   : > { %p35_p1 = scmp.ge.s32.totalorder %s33_s20, 2  ;;  %p356_p2 = scmp.lt.s32.totalorder %s1044_s19, 3 }
   0x5   : > { %s1254_s20 = smov (%p35_p1, %s33_s20), 0  ;;  %p357_p3 = pnand %p887_p0, %p356_p2 }
   0x6   : > { %p402_p4 = scmp.lt.s32.totalorder (!%p357_p3), %s1036_s17, 1  ;;  %s1047_s29 = smov (!%p357_p3), 1  }
   0x7   : > { %360 = sbr.rel (%p357_p3) target bundleno = 1155 (0x483), region = 64  ;;  %s1048_s30 = smov (!%p357_p3), 2  }
   0x8   : > { %s1049_s14 = smov (!%p357_p3), 4  }
   0xc   : > { %v469_v0 = vld [vmem:[%s1241_s2] sm:$0xff]  ;;  %v1046_v1 = vmov 0   ;;  %s1256_s17 = smov (!%p402_p4, %s1036_s17), 1  ;;  %v470_v2 = vld [vmem:[%s1241_s2 + $0x8] sm:$0xff]  ;;  %vm464_vm0 = vcmask 15360   ;;  %vm457_vm1 = vcmask 7168  }
   0xd   : > { %423 = vst [vmem:[#allocation2] sm:$0xf] %v1046_v1  ;;  %1019 = vset.pattern.permute.xlu2 %v1046_v1  ;;  %1020 = vset.pattern.permute.xlu1 %v1046_v1  ;;  %s971_s23 = sshll.u32 %s1256_s17, 3  ;;  %v547_v14 = vld [vmem:[%s1243_s4 + $0x8] sm:$0xff]  ;;  %v977_v31 = vld [vmem:[%s1240_s1] sm:$0xff]  ;;  %vm486_vm2 = vcmask 392192  }
   0xe   : > { %424 = vst [vmem:[#allocation2 + $0x8] sm:$0xf] %v1046_v1  ;;  %473 = vperm.xlu2 %1019, %v469_v0   ;;  %1021 = vset.pattern.permute.xlu0 %v1046_v1  ;;  %s1137_s26 = scalar_lea.vmem %s1239_s0, %s971_s23  ;;  %v675_v20 = vld [vmem:[%s1247_s8 + $0x8] sm:$0xff]  ;;  %v982_v49 = vld [vmem:[%s1244_s5] sm:$0xff]  ;;  %vm611_vm5 = vcmask 130048   ;;  %vm669_vm10 = vcmask 31744  }
   0xf   : > { %425 = vst [vmem:[#allocation3] sm:$0xf] %v1046_v1  ;;  %v431_v3 = vld [vmem:[%s1137_s26] sm:$0xf]  ;;  %v432_v4 = vld [vmem:[%s1137_s26 + $0x4] sm:$0xf] }
  0x10   : > { %426 = vst [vmem:[#allocation3 + $0x8] sm:$0xf] %v1046_v1  ;;  %v751_v32 = vld [vmem:[%s1249_s10 + $0x8] sm:$0xff]  ;;  %v973_v33 = vld [vmem:[%s1137_s26] sm:$0xff]  ;;  %s972_s28 = sshll.u32 %s1256_s17, 4 }
  0x11   : > { %427 = vst [vmem:[#allocation4] sm:$0xf] %v1046_v1  ;;  %622 = vmatpush.bf16.msra.mxu2 %v973_v33  ;;  %v546_v50 = vld [vmem:[%s1243_s4] sm:$0xff]  ;;  %v589_v52 = vld [vmem:[%s1245_s6 + $0x8] sm:$0xff]  ;;  %s417_s15 = scalar_lea.vmem %s1250_s11, %s972_s28 }
  0x12   : > { %428 = vst [vmem:[#allocation4 + $0x8] sm:$0xf] %v1046_v1  ;;  %v588_v51 = vld [vmem:[%s1245_s6] sm:$0xff] }
  0x13   : > { %429 = vst [vmem:[#allocation5] sm:$0xf] %v1046_v1  ;;  %v981_v62 = vld [vmem:[%s1242_s3] sm:$0xff] }
  0x14   : > { %v898_v5 = vld [vmem:[#allocation2] sm:$0xf]  ;;  %430 = vst [vmem:[#allocation5 + $0x8] sm:$0xf] %v1046_v1  ;;  %934 = vmatmul.msk.bf16.vlgmr.msra.gmra.mxu2 %vm611_vm5, %v982_v49 }
  0x15   : > { %v976_v6 = vld [vmem:[#allocation2 + $0x4] sm:$0xf0]  ;;  %433 = vst [vmem:[#allocation2 + $0x4] sm:$0xf] %v431_v3 }
  0x16   : > { %v899_v7 = vor.u32 %v976_v6, %v898_v5  ;;  %434 = vst [vmem:[#allocation2 + $0xc] sm:$0xf] %v432_v4  ;;  %478 = vperm.xlu2 %1019, %v470_v2   ;;  %v915_v11 = vld [vmem:[#allocation3] sm:$0xf] }
  0x17   : > { %v980_v12 = vld [vmem:[#allocation3 + $0x4] sm:$0xf0] }
  0x18   : > { %453 = vrot.lane.b32.xlu1 %v899_v7, %s1047_s29  ;;  %460 = vrot.lane.b32.xlu0 %v899_v7, %s1048_s30  ;;  %v916_v13 = vor.u32 %v980_v12, %v915_v11  ;;  %v941_v15 = vld [vmem:[#allocation4] sm:$0xf] }
  0x19   : > { %v985_v16 = vld [vmem:[#allocation4 + $0x4] sm:$0xf0] }
  0x1a   : > { %v942_v17 = vor.u32 %v985_v16, %v941_v15  ;;  %v958_v23 = vld [vmem:[#allocation5] sm:$0xf] }
  0x1b   : > { %v989_v24 = vld [vmem:[#allocation5 + $0x4] sm:$0xf0] }
  0x1c   : > { %v975_v8 = vld [vmem:[#allocation2 + $0x4] sm:$0xf]  ;;  %v1159_v28 = vor.u32 %v989_v24, %v958_v23 }
  0x1d   : > { %v900_v9 = vld [vmem:[#allocation2 + $0x8] sm:$0xf0]  ;;  %v894_v26 = vld [vmem:[#allocation2 + $0x4] sm:$0xf] }
  0x1e   : > { %v903_v10 = vor.u32 %v975_v8, %v900_v9  ;;  %532 = vrot.lane.b32.xlu2 %v916_v13, %s1047_s29  ;;  %v974_v27 = vld [vmem:[#allocation2 + $0x8] sm:$0xf0] }
  0x1f   : > { %v895_v30 = vor.u32 %v974_v27, %v894_v26  ;;  %v674_v26 = vld [vmem:[%s1247_s8] sm:$0xff] }
  0x20   : > { %455 = vrot.lane.b32.xlu1 %v903_v10, %s1047_s29  ;;  %462 = vrot.lane.b32.xlu0 %v903_v10, %s1048_s30 }
  0x26   : > { %555 = vperm.xlu2 %1019, %v547_v14  }
  0x28   : > { %538 = vrot.lane.b32.xlu0 %v916_v13, %s1048_s30 }
  0x2e   : > { %665 = vrot.lane.b32.xlu2 %v942_v17, %s1049_s14 }
  0x36   : > { %659 = vrot.lane.b32.xlu2 %v942_v17, %s1048_s30 }
  0x3e   : > { %683 = vperm.xlu2 %1019, %v675_v20  }
  0x46   : > { %736 = vrot.lane.b32.xlu2 %v1159_v28, %s1048_s30 }
  0x4e   : > { %759 = vperm.xlu2 %1019, %v751_v32  }
  0x68   : > { %v474_v34 = vpop.permute.xlu2 %473 }
  0x70   : > { %v479_v40 = vpop.permute.xlu2 %478 }
  0x78   : > { %v533_v57 = vpop.permute.xlu2 %532 }
  0x80   : > { %v556_v8 = vpop.permute.xlu2 %555 }
  0x88   : > { %v666_v27 = vpop.permute.xlu2 %665 }
  0x8a   : > { %v454_v18 = vpop.permute.xlu1 %453  ;;  %v461_v19 = vpop.permute.xlu0 %460 }
  0x90   : > { %v660_v32 = vpop.permute.xlu2 %659 }
  0x92   : > { %v463_v21 = vpop.permute.xlu0 %462  ;;  %v456_v25 = vpop.permute.xlu1 %455 }
  0x93   : > { %v465_v22 = vsel %vm464_vm0, %v461_v19, %v463_v21  ;;  %v458_v29 = vsel %vm457_vm1, %v454_v18, %v456_v25 }
  0x94   : > { %495 = vmatpush.bf16.msra.mxu0 %v465_v22 }
  0x97   : > { %v624_v0 = vpop.f32.mrf.mxu2 }
  0x98   : > { %496 = vmatpush.bf16.msra.mxu0 %v458_v29 }
  0x9a   : > { %v539_v53 = vpop.permute.xlu0 %538 }
  0x9c   : > { %497 = vmatpush.bf16.msra.mxu0 %v895_v30 }
  0x9f   : > { %908 = vmatmul.msk.bf16.vlgmr.msra.gmra.mxu0 %vm486_vm2, %v977_v31  ;;  %v626_v11 = vpop.f32.mrf.mxu2 }
 0x11c   : > { %v499_v35 = vpop.f32.mrf.mxu0 }
 0x11d   : > { %v500_v36 = vadd.f32 %v499_v35, %v474_v34 }
 0x11f   : > { %vm504_vm3 = vcmp.gt.f32.partialorder %v500_v36, 0.0  ;;  %v506_v37 = vmul.f32 0.01, %v500_v36 }
 0x121   : > { %v508_v38 = vsel %vm504_vm3, %v500_v36, %v506_v37  ;;  %v986_v37 = vld [vmem:[%s1246_s7] sm:$0xff] }
 0x122   : > { %v510_v39 = vpack.c.bf16 %v508_v38, %v508_v38 }
 0x124   : > { %512 = vst [vmem:[#allocation3 + $0x4] sm:$0xf] %v510_v39  ;;  %v501_v41 = vpop.f32.mrf.mxu0 }
 0x125   : > { %v502_v42 = vadd.f32 %v501_v41, %v479_v40 }
 0x127   : > { %vm505_vm4 = vcmp.gt.f32.partialorder %v502_v42, 0.0  ;;  %v507_v43 = vmul.f32 0.01, %v502_v42 }
 0x129   : > { %v509_v44 = vsel %vm505_vm4, %v502_v42, %v507_v43  ;;  %v684_v43 = vpop.permute.xlu2 %683 }
 0x12a   : > { %v511_v45 = vpack.c.bf16 %v509_v44, %v509_v44 }
 0x12b   : > { %v979_v46 = vld [vmem:[#allocation3 + $0x4] sm:$0xf] }
 0x12c   : > { %513 = vst [vmem:[#allocation3 + $0xc] sm:$0xf] %v511_v45  ;;  %v911_v60 = vld [vmem:[#allocation3 + $0x4] sm:$0xf] }
 0x133   : > { %v917_v47 = vld [vmem:[#allocation3 + $0x8] sm:$0xf0] }
 0x134   : > { %v920_v48 = vor.u32 %v979_v46, %v917_v47  ;;  %v978_v59 = vld [vmem:[#allocation3 + $0x8] sm:$0xf0] }
 0x135   : > { %v912_v61 = vor.u32 %v978_v59, %v911_v60 }
 0x136   : > { %534 = vrot.lane.b32.xlu0 %v920_v48, %s1047_s29  ;;  %540 = vrot.lane.b32.xlu1 %v920_v48, %s1048_s30 }
 0x13e   : > { %550 = vperm.xlu1 %1020, %v546_v50   ;;  %592 = vperm.xlu0 %1021, %v588_v51  }
 0x146   : > { %597 = vperm.xlu1 %1020, %v589_v52   ;;  %v750_v52 = vld [vmem:[%s1249_s10] sm:$0xff] }
 0x1a8   : > { %v541_v54 = vpop.permute.xlu1 %540  ;;  %v535_v56 = vpop.permute.xlu0 %534 }
 0x1a9   : > { %v542_v55 = vsel %vm464_vm0, %v539_v53, %v541_v54  ;;  %v536_v58 = vsel %vm457_vm1, %v533_v57, %v535_v56  ;;  %v737_v57 = vpop.permute.xlu2 %736 }
 0x1aa   : > { %571 = vmatpush.bf16.msra.mxu1 %v542_v55 }
 0x1ae   : > { %572 = vmatpush.bf16.msra.mxu1 %v536_v58 }
 0x1b0   : > { %v551_v63 = vpop.permute.xlu1 %550  ;;  %v593_v1 = vpop.permute.xlu0 %592 }
 0x1b1   : > { %v625_v4 = vadd.f32 %v624_v0, %v593_v1 }
 0x1b2   : > { %573 = vmatpush.bf16.msra.mxu1 %v912_v61 }
 0x1b5   : > { %925 = vmatmul.msk.bf16.vlgmr.msra.gmra.mxu1 %vm486_vm2, %v981_v62  ;;  %v990_v62 = vld [vmem:[%s1248_s9] sm:$0xff] }
 0x1b8   : > { %v598_v12 = vpop.permute.xlu1 %597 }
 0x1b9   : > { %v627_v17 = vadd.f32 %v626_v11, %v598_v12 }
 0x232   : > { %v575_v2 = vpop.f32.mrf.mxu1 }
 0x233   : > { %v576_v3 = vadd.f32 %v575_v2, %v551_v63 }
 0x235   : > { %vm580_vm6 = vcmp.gt.f32.partialorder %v576_v3, 0.0  ;;  %v582_v5 = vmul.f32 0.01, %v576_v3 }
 0x237   : > { %v584_v6 = vsel %vm580_vm6, %v576_v3, %v582_v5  ;;  %v760_v5 = vpop.permute.xlu2 %759 }
 0x238   : > { %v629_v7 = vadd.f32 %v625_v4, %v584_v6 }
 0x23a   : > { %vm631_vm7 = vcmp.gt.f32.partialorder %v629_v7, 0.0  ;;  %v633_v9 = vmul.f32 0.01, %v629_v7  ;;  %v577_v10 = vpop.f32.mrf.mxu1 }
 0x23b   : > { %v578_v13 = vadd.f32 %v577_v10, %v556_v8 }
 0x23c   : > { %v1192_v14 = vsel %vm631_vm7, %v629_v7, %v633_v9 }
 0x23d   : > { %v637_v15 = vpack.c.bf16 %v1192_v14, %v1192_v14  ;;  %vm581_vm8 = vcmp.gt.f32.partialorder %v578_v13, 0.0  ;;  %v583_v16 = vmul.f32 0.01, %v578_v13 }
 0x23f   : > { %639 = vst [vmem:[#allocation4 + $0x4] sm:$0xf] %v637_v15  ;;  %v585_v18 = vsel %vm581_vm8, %v578_v13, %v583_v16 }
 0x240   : > { %v630_v19 = vadd.f32 %v627_v17, %v585_v18 }
 0x242   : > { %vm632_vm9 = vcmp.gt.f32.partialorder %v630_v19, 0.0  ;;  %v634_v20 = vmul.f32 0.01, %v630_v19 }
 0x244   : > { %v1196_v21 = vsel %vm632_vm9, %v630_v19, %v634_v20 }
 0x245   : > { %v638_v22 = vpack.c.bf16 %v1196_v21, %v1196_v21 }
 0x246   : > { %v984_v23 = vld [vmem:[#allocation4 + $0x4] sm:$0xf] }
 0x247   : > { %640 = vst [vmem:[#allocation4 + $0xc] sm:$0xf] %v638_v22  ;;  %v937_v35 = vld [vmem:[#allocation4 + $0x4] sm:$0xf] }
 0x24e   : > { %v943_v24 = vld [vmem:[#allocation4 + $0x8] sm:$0xf0] }
 0x24f   : > { %v946_v25 = vor.u32 %v984_v23, %v943_v24  ;;  %v983_v34 = vld [vmem:[#allocation4 + $0x8] sm:$0xf0] }
 0x250   : > { %v938_v36 = vor.u32 %v983_v34, %v937_v35 }
 0x251   : > { %661 = vrot.lane.b32.xlu0 %v946_v25, %s1048_s30  ;;  %667 = vrot.lane.b32.xlu1 %v946_v25, %s1049_s14 }
 0x259   : > { %678 = vperm.xlu1 %1020, %v674_v26   ;;  %742 = vrot.lane.b32.xlu0 %v1159_v28, %s1049_s14 }
 0x2c3   : > { %v668_v29 = vpop.permute.xlu1 %667  ;;  %v662_v31 = vpop.permute.xlu0 %661 }
 0x2c4   : > { %v670_v30 = vsel %vm669_vm10, %v666_v27, %v668_v29  ;;  %v663_v33 = vsel %vm464_vm0, %v660_v32, %v662_v31 }
 0x2c5   : > { %699 = vmatpush.bf16.msra.mxu3 %v670_v30 }
 0x2c9   : > { %700 = vmatpush.bf16.msra.mxu3 %v663_v33 }
 0x2cb   : > { %v679_v28 = vpop.permute.xlu1 %678  ;;  %v743_v53 = vpop.permute.xlu0 %742 }
 0x2cd   : > { %701 = vmatpush.bf16.msra.mxu3 %v938_v36 }
 0x2d0   : > { %951 = vmatmul.msk.bf16.vlgmr.msra.gmra.mxu3 %vm486_vm2, %v986_v37 }
 0x353   : > { %v703_v38 = vpop.f32.mrf.mxu3 }
 0x354   : > { %v704_v39 = vadd.f32 %v703_v38, %v679_v28 }
 0x356   : > { %vm708_vm11 = vcmp.gt.f32.partialorder %v704_v39, 0.0  ;;  %v710_v40 = vmul.f32 0.01, %v704_v39 }
 0x358   : > { %v712_v41 = vsel %vm708_vm11, %v704_v39, %v710_v40 }
 0x359   : > { %v714_v42 = vpack.c.bf16 %v712_v41, %v712_v41 }
 0x35b   : > { %716 = vst [vmem:[#allocation5 + $0x4] sm:$0xf] %v714_v42  ;;  %v705_v44 = vpop.f32.mrf.mxu3 }
 0x35c   : > { %v706_v45 = vadd.f32 %v705_v44, %v684_v43 }
 0x35e   : > { %vm709_vm12 = vcmp.gt.f32.partialorder %v706_v45, 0.0  ;;  %v711_v46 = vmul.f32 0.01, %v706_v45 }
 0x360   : > { %v713_v47 = vsel %vm709_vm12, %v706_v45, %v711_v46 }
 0x361   : > { %v715_v48 = vpack.c.bf16 %v713_v47, %v713_v47 }
 0x362   : > { %v988_v49 = vld [vmem:[#allocation5 + $0x4] sm:$0xf] }
 0x363   : > { %717 = vst [vmem:[#allocation5 + $0xc] sm:$0xf] %v715_v48  ;;  %v954_v60 = vld [vmem:[#allocation5 + $0x4] sm:$0xf] }
 0x36a   : > { %v960_v50 = vld [vmem:[#allocation5 + $0x8] sm:$0xf0] }
 0x36b   : > { %v963_v51 = vor.u32 %v988_v49, %v960_v50  ;;  %v987_v59 = vld [vmem:[#allocation5 + $0x8] sm:$0xf0] }
 0x36c   : > { %v955_v61 = vor.u32 %v987_v59, %v954_v60 }
 0x36d   : > { %738 = vrot.lane.b32.xlu0 %v963_v51, %s1048_s30  ;;  %744 = vrot.lane.b32.xlu1 %v963_v51, %s1049_s14 }
 0x375   : > { %754 = vperm.xlu1 %1020, %v750_v52  }
 0x3df   : > { %v745_v54 = vpop.permute.xlu1 %744  ;;  %v739_v56 = vpop.permute.xlu0 %738 }
 0x3e0   : > { %v746_v55 = vsel %vm669_vm10, %v743_v53, %v745_v54  ;;  %v740_v58 = vsel %vm464_vm0, %v737_v57, %v739_v56 }
 0x3e1   : > { %775 = vmatpush.bf16.msrb.mxu2 %v746_v55 }
 0x3e5   : > { %776 = vmatpush.bf16.msrb.mxu2 %v740_v58 }
 0x3e7   : > { %v755_v63 = vpop.permute.xlu1 %754 }
 0x3e9   : > { %777 = vmatpush.bf16.msrb.mxu2 %v955_v61 }
 0x3ec   : > { %968 = vmatmul.msk.bf16.vlgmr.msrb.gmra.mxu2 %vm486_vm2, %v990_v62 }
 0x46f   : > { %v779_v0 = vpop.f32.mrf.mxu2 }
 0x470   : > { %v780_v1 = vadd.f32 %v779_v0, %v755_v63 }
 0x472   : > { %vm784_vm13 = vcmp.gt.f32.partialorder %v780_v1, 0.0  ;;  %v786_v2 = vmul.f32 0.01, %v780_v1 }
 0x474   : > { %v788_v3 = vsel %vm784_vm13, %v780_v1, %v786_v2 }
 0x475   : > { %v790_v4 = vadd.f32 %v788_v3, %v1192_v14 }
 0x477   : > { %vm792_vm14 = vcmp.gt.f32.partialorder %v790_v4, 0.0  ;;  %v794_v6 = vmul.f32 0.01, %v790_v4  ;;  %v781_v7 = vpop.f32.mrf.mxu2 }
 0x478   : > { %v782_v8 = vadd.f32 %v781_v7, %v760_v5 }
 0x479   : > { %v796_v9 = vsel %vm792_vm14, %v790_v4, %v794_v6 }
 0x47a   : > { %798 = vst [vmem:[%s417_s15] sm:$0xff] %v796_v9  ;;  %vm785_vm15 = vcmp.gt.f32.partialorder %v782_v8, 0.0  ;;  %v787_v10 = vmul.f32 0.01, %v782_v8 }
 0x47c   : > { %v789_v11 = vsel %vm785_vm15, %v782_v8, %v787_v10 }
 0x47d   : > { %v791_v12 = vadd.f32 %v789_v11, %v1196_v21 }
 0x47f   : > { %vm793_vm0 = vcmp.gt.f32.partialorder %v791_v12, 0.0  ;;  %v795_v13 = vmul.f32 0.01, %v791_v12 }
 0x481   : > { %v797_v15 = vsel %vm793_vm0, %v791_v12, %v795_v13 }
 0x482   : > { %799 = vst [vmem:[%s417_s15 + $0x8] sm:$0xff] %v797_v15 }
 0x483 PF: > { %s21_s19 = sadd.s32 1, %s1044_s19   ;;  %s1251_s17 = smov %s1040_s18 }
 0x484   : > { %p18_p5 = scmp.ge.s32.totalorder %s21_s19, 4   ;;  %s1252_s18 = smov %s1254_s20 }
 0x486   :  { %20 = sbr.rel (!%p18_p5) target bundleno = 2 (0x2), region = 98 }

</bundles_post_ra>
